<compile_context>
chip_gen: v7x
topology: tpu7x:2x2x1
jax: 0.10.0
libtpu: 0.0.40
codegen_flags: <defaults>
</compile_context>

<pallas_src>
import functools

import jax
import jax.numpy as jnp
from jax.experimental import pallas as pl
from jax.experimental.pallas import tpu as pltpu


# ----------------------------------------------------------------------------
# Helpers
# ----------------------------------------------------------------------------
def _round_up(x, m):
    return ((x + m - 1) // m) * m


@functools.lru_cache(maxsize=1)
def _vmem_capacity_bytes():
    try:
        return int(pltpu.get_tpu_info().vmem_capacity_bytes)
    except Exception:
        return 64 << 20  # conservative default (v7x physical VMEM)


def _mish(x):
    # mish(x) = x * tanh(softplus(x)).  With u = 1 + e^x:
    #   tanh(log u) = (u^2 - 1) / (u^2 + 1)  =>  mish(x) = x - 2x / (u^2 + 1)
    # One exp + one approx reciprocal (both EUP) instead of exp+log1p+tanh.
    # min(x, 20) matches F.softplus's threshold and keeps u^2 finite in f32
    # (mish(x) ~= x there anyway).
    u = 1.0 + jnp.exp(jnp.minimum(x, 20.0))
    return x - 2.0 * x * pl.reciprocal(u * u + 1.0, approx=True)


# ----------------------------------------------------------------------------
# Fused kernel
# ----------------------------------------------------------------------------
def _make_encoder_kernel(num_hidden):
    """Fused kernel: `num_hidden` [Linear+LN+Mish] blocks + Linear + L2 norm.

    Ref order: x, (w_i, bgb_i)*num_hidden, w_final, b_final, out.
      w_i     : (in_i, H_i)       bf16
      bgb_i   : (3, H_i)          f32   rows = [bias, gamma, beta]
      w_final : (H_last, latent)  bf16
      b_final : (1, latent)       f32
    """

    def kernel(*refs):
        x_ref = refs[0]
        o_ref = refs[-1]
        p = refs[1:-1]

        h = x_ref[...].astype(jnp.float32)

        for i in range(num_hidden):
            w_ref = p[2 * i]
            bgb = p[2 * i + 1][...]            # (3, H) f32

            # Linear (bf16 operands, f32 accumulate on the MXU).
            z = jnp.dot(
                h.astype(jnp.bfloat16), w_ref[...],
                preferred_element_type=jnp.float32,
            ) + bgb[0:1, :]

            # LayerNorm over features, eps = 1e-5. Two-pass (centered)
            # variance: no catastrophic cancellation; extra XLU reduce is
            # hidden under the EUP-bound activation work.
            inv_n = 1.0 / z.shape[-1]
            mean = jnp.sum(z, axis=-1, keepdims=True) * inv_n
            d = z - mean
            var = jnp.sum(d * d, axis=-1, keepdims=True) * inv_n
            zn = d * jax.lax.rsqrt(var + 1e-5) * bgb[1:2, :] + bgb[2:3, :]

            # Mish (Dropout = identity, eval mode).
            # TODO(synk): training-mode dropout (random masking) not implemented.
            h = _mish(zn)

        wf_ref = p[2 * num_hidden]
        bf_ref = p[2 * num_hidden + 1]
        y = jnp.dot(
            h.astype(jnp.bfloat16), wf_ref[...],
            preferred_element_type=jnp.float32,
        ) + bf_ref[...]

        # F.normalize(y, dim=-1): y / max(||y||, 1e-12) via rsqrt.
        ss = jnp.sum(y * y, axis=-1, keepdims=True)
        o_ref[...] = (y * jax.lax.rsqrt(jnp.maximum(ss, 1e-24))).astype(o_ref.dtype)

    return kernel


# ----------------------------------------------------------------------------
# Wrapper: single fused pallas_call with a batch grid
# ----------------------------------------------------------------------------
def _resident_spec(shape, single_buffer):
    """BlockSpec for a grid-invariant (VMEM-resident) operand.

    With a constant index_map there is nothing to pipeline, so when the
    resident weights are a big fraction of VMEM we request a single buffer
    instead of the default two (matters on v7x at large hidden widths).
    """
    index_map = lambda i: (0,) * len(shape)
    if single_buffer and hasattr(pl, "Buffered"):
        try:
            return pl.BlockSpec(shape, index_map, pipeline_mode=pl.Buffered(1))
        except TypeError:
            pass
    return pl.BlockSpec(shape, index_map)


def _encoder_forward_impl(x, hidden_params, final_params, *, tile_b=None,
                          out_dtype=jnp.float32):
    B, in_dim = x.shape
    num_hidden = len(hidden_params)
    latent_dim = final_params["b"].shape[0]
    widths = [p["w"].shape[1] for p in hidden_params]
    max_w = max([in_dim, latent_dim] + widths)

    # --- operand preparation: bf16 weights; bias/gamma/beta packed (3, H). ---
    prepared = []
    for prm in hidden_params:
        w = prm["w"].astype(jnp.bfloat16)
        bgb = jnp.stack([prm["b"], prm["gamma"], prm["beta"]], axis=0)
        prepared += [w, bgb.astype(jnp.float32)]
    wf = final_params["w"].astype(jnp.bfloat16)
    bf = final_params["b"].reshape(1, -1).astype(jnp.float32)
    prepared += [wf, bf]
    resident_bytes = sum(int(a.size) * a.dtype.itemsize for a in prepared)

    # --- VMEM budget & generation-aware batch tile. ---
    vmem_cap = _vmem_capacity_bytes()
    vmem_limit = max(32 << 20, min((vmem_cap * 3) // 4, 100 << 20))
    single_buffer_weights = 2 * resident_bytes > vmem_limit // 2

    if tile_b is None:
        # v5e/v6e (128 MiB VMEM) can afford bigger batch tiles than v7x (64 MiB).
        tile_b = 2048 if vmem_cap >= (100 << 20) else 512

    if B >= 16:
        # >= 2 grid steps so ("parallel",) can shard the batch across both
        # v7x TensorCores; harmless on single-TC v5e/v6e.
        tb = min(tile_b, _round_up(-(-B // 2), 8))
    else:
        tb = B  # single block; block dim == full array dim is always legal.

    def _fits(t):
        blocks = 2 * t * (in_dim + latent_dim) * 4     # double-buffered x / out
        act = 6 * t * max_w * 4                        # live f32 intermediates
        wfac = 1 if single_buffer_weights else 2
        return wfac * resident_bytes + blocks + act <= vmem_limit

    while tb > 8 and not _fits(tb):
        tb = max(8, _round_up(tb // 2, 8))

    grid = (pl.cdiv(B, tb),)

    in_specs = [pl.BlockSpec((tb, in_dim), lambda i: (i, 0))]
    in_specs += [_resident_spec(a.shape, single_buffer_weights) for a in prepared]

    # Unpadded output: only the real latent bytes are written (masked stores)
    # and no wrapper-side slice / extra HBM round-trip is needed.
    out = pl.pallas_call(
        _make_encoder_kernel(num_hidden),
        out_shape=jax.ShapeDtypeStruct((B, latent_dim), out_dtype),
        grid=grid,
        in_specs=in_specs,
        out_specs=pl.BlockSpec((tb, latent_dim), lambda i: (i, 0)),
        compiler_params=pltpu.CompilerParams(
            dimension_semantics=("parallel",),
            vmem_limit_bytes=int(vmem_limit),
        ),
    )(x, *prepared)
    return out


encoder_forward = jax.jit(_encoder_forward_impl,
                          static_argnames=("tile_b", "out_dtype"))


# ----------------------------------------------------------------------------
# Parameter init (matches nn.Linear default init; LN gamma=1, beta=0)
# ----------------------------------------------------------------------------
def init_encoder_params(key, input_dim, hidden_layers, latent_dim):
    params = []
    prev = input_dim
    for h in hidden_layers:
        key, kw, kb = jax.random.split(key, 3)
        bound = 1.0 / jnp.sqrt(prev)
        w = jax.random.uniform(kw, (prev, h), jnp.float32, -bound, bound)
        b = jax.random.uniform(kb, (h,), jnp.float32, -bound, bound)
        params.append(
            dict(w=w, b=b, gamma=jnp.ones((h,), jnp.float32),
                 beta=jnp.zeros((h,), jnp.float32))
        )
        prev = h
    key, kw, kb = jax.random.split(key, 3)
    bound = 1.0 / jnp.sqrt(prev)
    w = jax.random.uniform(kw, (prev, latent_dim), jnp.float32, -bound, bound)
    b = jax.random.uniform(kb, (latent_dim,), jnp.float32, -bound, bound)
    return params, dict(w=w, b=b)


# ----------------------------------------------------------------------------
# Pure-JAX f32 reference (for a sanity check)
# ----------------------------------------------------------------------------
def _reference_forward(x, hidden_params, final_params):
    h = x
    for p in hidden_params:
        z = h @ p["w"] + p["b"]
        mean = jnp.mean(z, axis=-1, keepdims=True)
        var = jnp.mean((z - mean) ** 2, axis=-1, keepdims=True)
        zn = (z - mean) / jnp.sqrt(var + 1e-5) * p["gamma"] + p["beta"]
        sp = jnp.where(zn > 20.0, zn, jnp.log1p(jnp.exp(jnp.minimum(zn, 20.0))))
        h = zn * jnp.tanh(sp)
    y = h @ final_params["w"] + final_params["b"]
    n = jnp.linalg.norm(y, axis=-1, keepdims=True)
    return y / jnp.maximum(n, 1e-12)


# ----------------------------------------------------------------------------
# Main
# ----------------------------------------------------------------------------
if __name__ == "__main__":
    input_dim = 32
    hidden_layers = (64, 64)
    latent_dim = 16
    batch = 16   # >= 16 -> >= 2 grid steps (exercises the megacore path)

    key = jax.random.PRNGKey(0)
    key, kx, kp = jax.random.split(key, 3)

    x = jax.random.normal(kx, (batch, input_dim), jnp.float32)
    hidden_params, final_params = init_encoder_params(
        kp, input_dim, hidden_layers, latent_dim
    )

    out = encoder_forward(x, hidden_params, final_params)
    out = jax.block_until_ready(out)

    assert out.shape == (batch, latent_dim)
    assert bool(jnp.all(jnp.isfinite(out)))

    # Rows are unit L2 norm (F.normalize semantics).
    norms = jnp.linalg.norm(out, axis=-1)
    assert bool(jnp.all(jnp.abs(norms - 1.0) < 1e-4))

    # Loose check vs. f32 reference (kernel uses bf16 matmul operands and an
    # approx reciprocal inside Mish -- documented accuracy trade-off).
    ref = _reference_forward(x, hidden_params, final_params)
    assert bool(jnp.max(jnp.abs(out - ref)) < 5e-2)

    print("KERNEL_OK")
</pallas_src>

<mosaic_0001>
module attributes {stable_mosaic.version = 11 : i64} {
  func.func @kernel(%arg0: i32, %arg1: memref<8x32xf32, #tpu.memory_space<vmem>>, %arg2: memref<32x64xbf16, #tpu.memory_space<vmem>>, %arg3: memref<3x64xf32, #tpu.memory_space<vmem>>, %arg4: memref<64x64xbf16, #tpu.memory_space<vmem>>, %arg5: memref<3x64xf32, #tpu.memory_space<vmem>>, %arg6: memref<64x16xbf16, #tpu.memory_space<vmem>>, %arg7: memref<1x16xf32, #tpu.memory_space<vmem>>, %arg8: memref<8x16xf32, #tpu.memory_space<vmem>>) attributes {dimension_semantics = [#tpu.dimension_semantics<parallel>], iteration_bounds = array<i64: 2>, scalar_prefetch = 0 : i64, scratch_operands = 0 : i64, tpu.core_type = #tpu.core_type<tc>, window_params = [{transform_indices = @transform_0, window_bounds = array<i64: 8, 32>}, {pipeline_mode = #tpu.pipeline_mode<synchronous>, transform_indices = @transform_1, window_bounds = array<i64: 32, 64>}, {pipeline_mode = #tpu.pipeline_mode<synchronous>, transform_indices = @transform_2, window_bounds = array<i64: 3, 64>}, {pipeline_mode = #tpu.pipeline_mode<synchronous>, transform_indices = @transform_3, window_bounds = array<i64: 64, 64>}, {pipeline_mode = #tpu.pipeline_mode<synchronous>, transform_indices = @transform_4, window_bounds = array<i64: 3, 64>}, {pipeline_mode = #tpu.pipeline_mode<synchronous>, transform_indices = @transform_5, window_bounds = array<i64: 64, 16>}, {pipeline_mode = #tpu.pipeline_mode<synchronous>, transform_indices = @transform_6, window_bounds = array<i64: 1, 16>}, {transform_indices = @transform_7, window_bounds = array<i64: 8, 16>}]} {
    %c0 = arith.constant 0 : index
    %c0_0 = arith.constant 0 : index
    %0 = vector.load %arg1[%c0, %c0_0] : memref<8x32xf32, #tpu.memory_space<vmem>>, vector<8x32xf32>
    %c0_1 = arith.constant 0 : index
    %c0_2 = arith.constant 0 : index
    %1 = vector.load %arg3[%c0_1, %c0_2] : memref<3x64xf32, #tpu.memory_space<vmem>>, vector<3x64xf32>
    %2 = arith.truncf %0 : vector<8x32xf32> to vector<8x32xbf16>
    %c0_3 = arith.constant 0 : index
    %c0_4 = arith.constant 0 : index
    %3 = vector.load %arg2[%c0_3, %c0_4] : memref<32x64xbf16, #tpu.memory_space<vmem>>, vector<32x64xbf16>
    %cst = arith.constant dense<0.000000e+00> : vector<8x64xf32>
    %4 = tpu.matmul %2, %3, %cst {dimension_numbers = #tpu.dot_dimension_numbers<[1], [0], [0], [1], [0, 0, 1, 1], [], []>} : vector<8x32xbf16>, vector<32x64xbf16>, vector<8x64xf32> -> vector<8x64xf32>
    %5 = vector.extract_strided_slice %1 {offsets = [0, 0], sizes = [1, 64], strides = [1, 1]} : vector<3x64xf32> to vector<1x64xf32>
    %6 = vector.broadcast %5 : vector<1x64xf32> to vector<8x64xf32>
    %7 = arith.addf %4, %6 : vector<8x64xf32>
    %cst_5 = arith.constant dense<0.000000e+00> : vector<8xf32>
    %8 = vector.multi_reduction <add>, %7, %cst_5 [1] : vector<8x64xf32> to vector<8xf32>
    %9 = vector.shape_cast %8 : vector<8xf32> to vector<8x1xf32>
    %cst_6 = arith.constant 1.562500e-02 : f32
    %10 = vector.broadcast %cst_6 : f32 to vector<8x1xf32>
    %11 = arith.mulf %9, %10 : vector<8x1xf32>
    %12 = vector.broadcast %11 : vector<8x1xf32> to vector<8x64xf32>
    %13 = arith.subf %7, %12 : vector<8x64xf32>
    %14 = arith.mulf %13, %13 : vector<8x64xf32>
    %cst_7 = arith.constant dense<0.000000e+00> : vector<8xf32>
    %15 = vector.multi_reduction <add>, %14, %cst_7 [1] : vector<8x64xf32> to vector<8xf32>
    %16 = vector.shape_cast %15 : vector<8xf32> to vector<8x1xf32>
    %cst_8 = arith.constant 1.562500e-02 : f32
    %17 = vector.broadcast %cst_8 : f32 to vector<8x1xf32>
    %18 = arith.mulf %16, %17 : vector<8x1xf32>
    %cst_9 = arith.constant 9.99999974E-6 : f32
    %19 = vector.broadcast %cst_9 : f32 to vector<8x1xf32>
    %20 = arith.addf %18, %19 : vector<8x1xf32>
    %21 = math.rsqrt %20 : vector<8x1xf32>
    %22 = vector.broadcast %21 : vector<8x1xf32> to vector<8x64xf32>
    %23 = arith.mulf %13, %22 : vector<8x64xf32>
    %24 = vector.extract_strided_slice %1 {offsets = [1, 0], sizes = [1, 64], strides = [1, 1]} : vector<3x64xf32> to vector<1x64xf32>
    %25 = vector.broadcast %24 : vector<1x64xf32> to vector<8x64xf32>
    %26 = arith.mulf %23, %25 : vector<8x64xf32>
    %27 = vector.extract_strided_slice %1 {offsets = [2, 0], sizes = [1, 64], strides = [1, 1]} : vector<3x64xf32> to vector<1x64xf32>
    %28 = vector.broadcast %27 : vector<1x64xf32> to vector<8x64xf32>
    %29 = arith.addf %26, %28 : vector<8x64xf32>
    %cst_10 = arith.constant 2.000000e+01 : f32
    %30 = vector.broadcast %cst_10 : f32 to vector<8x64xf32>
    %31 = arith.minimumf %29, %30 : vector<8x64xf32>
    %32 = math.exp %31 : vector<8x64xf32>
    %cst_11 = arith.constant 1.000000e+00 : f32
    %33 = vector.broadcast %cst_11 : f32 to vector<8x64xf32>
    %34 = arith.addf %33, %32 : vector<8x64xf32>
    %cst_12 = arith.constant 2.000000e+00 : f32
    %35 = vector.broadcast %cst_12 : f32 to vector<8x64xf32>
    %36 = arith.mulf %35, %29 : vector<8x64xf32>
    %37 = arith.mulf %34, %34 : vector<8x64xf32>
    %cst_13 = arith.constant 1.000000e+00 : f32
    %38 = vector.broadcast %cst_13 : f32 to vector<8x64xf32>
    %39 = arith.addf %37, %38 : vector<8x64xf32>
    %40 = tpu.reciprocal %39 {approx = true} : vector<8x64xf32> -> vector<8x64xf32>
    %41 = arith.mulf %36, %40 : vector<8x64xf32>
    %42 = arith.subf %29, %41 : vector<8x64xf32>
    %c0_14 = arith.constant 0 : index
    %c0_15 = arith.constant 0 : index
    %43 = vector.load %arg5[%c0_14, %c0_15] : memref<3x64xf32, #tpu.memory_space<vmem>>, vector<3x64xf32>
    %44 = arith.truncf %42 : vector<8x64xf32> to vector<8x64xbf16>
    %c0_16 = arith.constant 0 : index
    %c0_17 = arith.constant 0 : index
    %45 = vector.load %arg4[%c0_16, %c0_17] : memref<64x64xbf16, #tpu.memory_space<vmem>>, vector<64x64xbf16>
    %cst_18 = arith.constant dense<0.000000e+00> : vector<8x64xf32>
    %46 = tpu.matmul %44, %45, %cst_18 {dimension_numbers = #tpu.dot_dimension_numbers<[1], [0], [0], [1], [0, 0, 1, 1], [], []>} : vector<8x64xbf16>, vector<64x64xbf16>, vector<8x64xf32> -> vector<8x64xf32>
    %47 = vector.extract_strided_slice %43 {offsets = [0, 0], sizes = [1, 64], strides = [1, 1]} : vector<3x64xf32> to vector<1x64xf32>
    %48 = vector.broadcast %47 : vector<1x64xf32> to vector<8x64xf32>
    %49 = arith.addf %46, %48 : vector<8x64xf32>
    %cst_19 = arith.constant dense<0.000000e+00> : vector<8xf32>
    %50 = vector.multi_reduction <add>, %49, %cst_19 [1] : vector<8x64xf32> to vector<8xf32>
    %51 = vector.shape_cast %50 : vector<8xf32> to vector<8x1xf32>
    %cst_20 = arith.constant 1.562500e-02 : f32
    %52 = vector.broadcast %cst_20 : f32 to vector<8x1xf32>
    %53 = arith.mulf %51, %52 : vector<8x1xf32>
    %54 = vector.broadcast %53 : vector<8x1xf32> to vector<8x64xf32>
    %55 = arith.subf %49, %54 : vector<8x64xf32>
    %56 = arith.mulf %55, %55 : vector<8x64xf32>
    %cst_21 = arith.constant dense<0.000000e+00> : vector<8xf32>
    %57 = vector.multi_reduction <add>, %56, %cst_21 [1] : vector<8x64xf32> to vector<8xf32>
    %58 = vector.shape_cast %57 : vector<8xf32> to vector<8x1xf32>
    %cst_22 = arith.constant 1.562500e-02 : f32
    %59 = vector.broadcast %cst_22 : f32 to vector<8x1xf32>
    %60 = arith.mulf %58, %59 : vector<8x1xf32>
    %cst_23 = arith.constant 9.99999974E-6 : f32
    %61 = vector.broadcast %cst_23 : f32 to vector<8x1xf32>
    %62 = arith.addf %60, %61 : vector<8x1xf32>
    %63 = math.rsqrt %62 : vector<8x1xf32>
    %64 = vector.broadcast %63 : vector<8x1xf32> to vector<8x64xf32>
    %65 = arith.mulf %55, %64 : vector<8x64xf32>
    %66 = vector.extract_strided_slice %43 {offsets = [1, 0], sizes = [1, 64], strides = [1, 1]} : vector<3x64xf32> to vector<1x64xf32>
    %67 = vector.broadcast %66 : vector<1x64xf32> to vector<8x64xf32>
    %68 = arith.mulf %65, %67 : vector<8x64xf32>
    %69 = vector.extract_strided_slice %43 {offsets = [2, 0], sizes = [1, 64], strides = [1, 1]} : vector<3x64xf32> to vector<1x64xf32>
    %70 = vector.broadcast %69 : vector<1x64xf32> to vector<8x64xf32>
    %71 = arith.addf %68, %70 : vector<8x64xf32>
    %cst_24 = arith.constant 2.000000e+01 : f32
    %72 = vector.broadcast %cst_24 : f32 to vector<8x64xf32>
    %73 = arith.minimumf %71, %72 : vector<8x64xf32>
    %74 = math.exp %73 : vector<8x64xf32>
    %cst_25 = arith.constant 1.000000e+00 : f32
    %75 = vector.broadcast %cst_25 : f32 to vector<8x64xf32>
    %76 = arith.addf %75, %74 : vector<8x64xf32>
    %cst_26 = arith.constant 2.000000e+00 : f32
    %77 = vector.broadcast %cst_26 : f32 to vector<8x64xf32>
    %78 = arith.mulf %77, %71 : vector<8x64xf32>
    %79 = arith.mulf %76, %76 : vector<8x64xf32>
    %cst_27 = arith.constant 1.000000e+00 : f32
    %80 = vector.broadcast %cst_27 : f32 to vector<8x64xf32>
    %81 = arith.addf %79, %80 : vector<8x64xf32>
    %82 = tpu.reciprocal %81 {approx = true} : vector<8x64xf32> -> vector<8x64xf32>
    %83 = arith.mulf %78, %82 : vector<8x64xf32>
    %84 = arith.subf %71, %83 : vector<8x64xf32>
    %85 = arith.truncf %84 : vector<8x64xf32> to vector<8x64xbf16>
    %c0_28 = arith.constant 0 : index
    %c0_29 = arith.constant 0 : index
    %86 = vector.load %arg6[%c0_28, %c0_29] : memref<64x16xbf16, #tpu.memory_space<vmem>>, vector<64x16xbf16>
    %cst_30 = arith.constant dense<0.000000e+00> : vector<8x16xf32>
    %87 = tpu.matmul %85, %86, %cst_30 {dimension_numbers = #tpu.dot_dimension_numbers<[1], [0], [0], [1], [0, 0, 1, 1], [], []>} : vector<8x64xbf16>, vector<64x16xbf16>, vector<8x16xf32> -> vector<8x16xf32>
    %c0_31 = arith.constant 0 : index
    %c0_32 = arith.constant 0 : index
    %88 = vector.load %arg7[%c0_31, %c0_32] : memref<1x16xf32, #tpu.memory_space<vmem>>, vector<1x16xf32>
    %89 = vector.broadcast %88 : vector<1x16xf32> to vector<8x16xf32>
    %90 = arith.addf %87, %89 : vector<8x16xf32>
    %91 = arith.mulf %90, %90 : vector<8x16xf32>
    %cst_33 = arith.constant dense<0.000000e+00> : vector<8xf32>
    %92 = vector.multi_reduction <add>, %91, %cst_33 [1] : vector<8x16xf32> to vector<8xf32>
    %93 = vector.shape_cast %92 : vector<8xf32> to vector<8x1xf32>
    %cst_34 = arith.constant 1.000000e-24 : f32
    %94 = vector.broadcast %cst_34 : f32 to vector<8x1xf32>
    %95 = arith.maximumf %93, %94 : vector<8x1xf32>
    %96 = math.rsqrt %95 : vector<8x1xf32>
    %97 = vector.broadcast %96 : vector<8x1xf32> to vector<8x16xf32>
    %98 = arith.mulf %90, %97 : vector<8x16xf32>
    %c0_35 = arith.constant 0 : index
    %c0_36 = arith.constant 0 : index
    %99 = vector.load %arg8[%c0_35, %c0_36] : memref<8x16xf32, #tpu.memory_space<vmem>>, vector<8x16xf32>
    tpu.vector_store %arg8[%c0_35, %c0_36], %98 {strides = array<i32>} : memref<8x16xf32, #tpu.memory_space<vmem>>, vector<8x16xf32>,
    return
  }
  func.func @transform_0(%arg0: i32) -> (i32, i32) {
    %c0_i32 = arith.constant 0 : i32
    %c0_i32_0 = arith.constant 0 : i32
    return %arg0, %c0_i32 : i32, i32
  }
  func.func @transform_1(%arg0: i32) -> (i32, i32) {
    %c0_i32 = arith.constant 0 : i32
    %c0_i32_0 = arith.constant 0 : i32
    %c0_i32_1 = arith.constant 0 : i32
    return %c0_i32, %c0_i32_0 : i32, i32
  }
  func.func @transform_2(%arg0: i32) -> (i32, i32) {
    %c0_i32 = arith.constant 0 : i32
    %c0_i32_0 = arith.constant 0 : i32
    %c0_i32_1 = arith.constant 0 : i32
    return %c0_i32, %c0_i32_0 : i32, i32
  }
  func.func @transform_3(%arg0: i32) -> (i32, i32) {
    %c0_i32 = arith.constant 0 : i32
    %c0_i32_0 = arith.constant 0 : i32
    %c0_i32_1 = arith.constant 0 : i32
    return %c0_i32, %c0_i32_0 : i32, i32
  }
  func.func @transform_4(%arg0: i32) -> (i32, i32) {
    %c0_i32 = arith.constant 0 : i32
    %c0_i32_0 = arith.constant 0 : i32
    %c0_i32_1 = arith.constant 0 : i32
    return %c0_i32, %c0_i32_0 : i32, i32
  }
  func.func @transform_5(%arg0: i32) -> (i32, i32) {
    %c0_i32 = arith.constant 0 : i32
    %c0_i32_0 = arith.constant 0 : i32
    %c0_i32_1 = arith.constant 0 : i32
    return %c0_i32, %c0_i32_0 : i32, i32
  }
  func.func @transform_6(%arg0: i32) -> (i32, i32) {
    %c0_i32 = arith.constant 0 : i32
    %c0_i32_0 = arith.constant 0 : i32
    %c0_i32_1 = arith.constant 0 : i32
    return %c0_i32, %c0_i32_0 : i32, i32
  }
  func.func @transform_7(%arg0: i32) -> (i32, i32) {
    %c0_i32 = arith.constant 0 : i32
    %c0_i32_0 = arith.constant 0 : i32
    return %arg0, %c0_i32 : i32, i32
  }
}

</mosaic_0001>

<bundles_post_ra>
// kernel: _encoder_forward_impl.1
= control target key start
LH: loop header
LB: loop body
LE: loop exit
PB: predicated region body
PF: predicated region fallthrough
CT: control target
= control target key end

     0   :  { %12 = vsyncpa [#allocation3], 0  ;;  %s1061_s0 = inlined_call_operand.vmem [shape: f32[16,32], index: 0, kind: input, shape index: {}]   ;;  %s1062_s1 = inlined_call_operand.vmem [shape: bf16[32,64], index: 1, kind: input, shape index: {}]   ;;  %s1063_s2 = inlined_call_operand.vmem [shape: f32[3,64], index: 2, kind: input, shape index: {}]   ;;  %s1064_s3 = inlined_call_operand.vmem [shape: bf16[64,64], index: 3, kind: input, shape index: {}]   ;;  %s1065_s4 = inlined_call_operand.vmem [shape: f32[3,64], index: 4, kind: input, shape index: {}]   ;;  %s1066_s5 = inlined_call_operand.vmem [shape: bf16[64,16], index: 5, kind: input, shape index: {}]   ;;  %s1067_s6 = inlined_call_operand.vmem [shape: f32[1,16], index: 6, kind: input, shape index: {}]   ;;  %s1068_s7 = inlined_call_operand.hbm [shape: f32[16,16], index: 7, kind: output, shape index: {}]  }
   0x1   :  { %14 = vsyncpa [#allocation3 + $0x1], 0  ;;  %s896_s24 = smov 0   ;;  %s898_s25 = smov 0  }
   0x2   :  { %s900_s26 = smov 0   ;;  %s902_s27 = smov 0  }
   0x3 LB: > { %s917_s28 = sadd.s32 4294967295, %s851_s27   ;;  %s655_s29 = sadd.s32 4294967294, %s851_s27   ;;  %s851_s27 = sphi %s902_s27, %s1074_s27   ;;  %s847_s26 = sphi %s900_s26, %s1073_s26   ;;  %s843_s25 = sphi %s898_s25, %s1072_s25   ;;  %s839_s24 = sphi %s896_s24, %s1071_s24  }
   0x4   : > { %s921_s30 = sadd.s32 1, %s851_s27   ;;  %s179_s8 = sadd.s32 1, %s847_s26 }
   0x5   : > { %s176_s9 = ssub.s32 %s851_s27, %s921_s30  ;;  %p189_p0 = scmp.ne.s32.totalorder %s847_s26, %s843_s25 }
   0x6   : > { %p177_p1 = scmp.eq.s32.totalorder %s176_s9, 0  ;;  %p190_p2 = scmp.eq.s32.totalorder %s917_s28, 1 }
   0x7   : > { %p195_p3 = scmp.ne.s32.totalorder %s843_s25, %s839_s24  ;;  %p196_p4 = scmp.eq.s32.totalorder %s655_s29, 1 }
   0x8   : > { %s932_s10 = scalar_select %p177_p1, %s847_s26, %s179_s8  }
   0x9   : > { %p934_p5 = por %p190_p2, %p189_p0  ;;  %p938_p6 = por %p196_p4, %p195_p3 }
   0xa   : > { %p658_p7 = scmp.ge.s32.totalorder %s851_s27, 1  ;;  %p239_p8 = scmp.lt.s32.totalorder %s851_s27, 3 }
   0xc   : > { %p240_p9 = pnand %p658_p7, %p239_p8 }
   0xd   : > { %v765_v0 = vld [vmem:[%s1062_s1] sm:$0xff] (!%p240_p9)   ;;  %v853_v1 = vmov (!%p240_p9), 0.0   ;;  %v766_v2 = vld [vmem:[%s1062_s1 + $0x8] sm:$0xff] (!%p240_p9)   ;;  %vm854_vm0 = vmmov (!%p240_p9), 0   ;;  %p270_p10 = scmp.lt.s32.totalorder (!%p240_p9), %s917_s28, 1  ;;  %vm298_vm1 = vcmask (!%p240_p9), 261120   ;;  %v282_v5 = vlaneseq (!%p240_p9) }
   0xe   : > { %243 = sbr.rel (%p240_p9) target bundleno = 1546 (0x60a), region = 48  ;;  %692 = vmatprep.subr.bf16.mxu0 (!%p240_p9), %v853_v1  ;;  %700 = vmatprep.subr.bf16.mxu1 (!%p240_p9), %v853_v1  ;;  %v276_v8 = vld [vmem:[%s1063_s2] sm:$0x7] (!%p240_p9)  ;;  %vm342_vm2 = vcmask (!%p240_p9), 523264   ;;  %v768_v22 = vld [vmem:[%s1064_s3 + $0x8] sm:$0xff] (!%p240_p9)   ;;  %v769_v23 = vld [vmem:[%s1064_s3 + $0x10] sm:$0xff] (!%p240_p9)  }
   0xf   : > { %693 = vmatpush3.bf16.msra.mxu0 (!%p240_p9), %v765_v0  ;;  %696 = vmatprep.mubr.msk.bf16.mxu0 (!%p240_p9), %vm854_vm0, %v853_v1  ;;  %v962_v6 = vshrl.u32 (!%p240_p9), %v282_v5, 7  ;;  %v767_v21 = vld [vmem:[%s1064_s3] sm:$0xff] (!%p240_p9)   ;;  %v770_v24 = vld [vmem:[%s1064_s3 + $0x18] sm:$0xff] (!%p240_p9)   ;;  %v772_v61 = vld [vmem:[%s1066_s5 + $0x8] sm:$0xff] (!%p240_p9)   ;;  %vm574_vm3 = vcmask (!%p240_p9), 130048   ;;  %s267_s16 = sand.u32 (!%p240_p9), 1, %s843_s25  }
  0x10   : > { %694 = vmatprep.subr.bf16.mxu0 (!%p240_p9), %v853_v1  ;;  %708 = vmatprep.mubr.msk.bf16.mxu1 (!%p240_p9), %vm854_vm0, %v853_v1  ;;  %v376_v47 = vld [vmem:[%s1065_s4] sm:$0x7] (!%p240_p9)  ;;  %v773_v62 = vld [vmem:[%s1066_s5 + $0x10] sm:$0xff] (!%p240_p9)   ;;  %v774_v63 = vld [vmem:[%s1066_s5 + $0x18] sm:$0xff] (!%p240_p9)   ;;  %s583_s29 = scalar_lea.sflag (!%p240_p9), [#allocation3], %s267_s16 }
  0x11   : > { %v284_v7 = vsub.s32 (!%p240_p9), 0, %v962_v6  ;;  %701 = vmatpush3.bf16.msra.mxu1 (!%p240_p9), %v767_v21  ;;  %v358_v28 = vsub.s32 (!%p240_p9), 1, %v962_v6  ;;  %v363_v29 = vsub.s32 (!%p240_p9), 2, %v962_v6  ;;  %v771_v60 = vld [vmem:[%s1066_s5] sm:$0xff] (!%p240_p9)  }
  0x12   : > { %702 = vmatprep.subr.bf16.mxu1 (!%p240_p9), %v853_v1 }
  0x13   : > { %695 = vmatpush3.bf16.msra.mxu0 (!%p240_p9), %v766_v2  ;;  %v285_v9 = vrot.slane (!%p240_p9), %v276_v8, %v284_v7  ;;  %v359_v30 = vrot.slane (!%p240_p9), %v276_v8, %v358_v28  ;;  %v364_v32 = vrot.slane (!%p240_p9), %v276_v8, %v363_v29  ;;  %v389_v48 = vrot.slane (!%p240_p9), %v376_v47, %v284_v7 }
  0x14   : > { %712 = vmatprep.subr.bf16.mxu0 (!%p240_p9), %v853_v1  ;;  %v478_v6 = vrot.slane (!%p240_p9), %v376_v47, %v363_v29 }
  0x15   : > { %s271_s17 = scalar_select %p270_p10, %s917_s28, 1  ;;  %703 = vmatpush3.bf16.msra.mxu1 %v768_v22 }
  0x16   : > { %704 = vmatprep.subr.bf16.mxu1 %v853_v1 }
  0x17   : > { %s660_s18 = sshll.u32 %s271_s17, 3  ;;  %s659_s17 = sshll.u32 %s267_s16, 3 }
  0x18   : > { %s273_s21 = scalar_lea.vmem %s1061_s0, %s660_s18  ;;  %s676_s18 = sshll.u32 %s917_s28, 7 }
  0x19   : > { %v275_v3 = vld [vmem:[%s273_s21] sm:$0xff]  ;;  %705 = vmatpush3.bf16.msra.mxu1 %v769_v23  ;;  %s269_s19 = scalar_lea.vmem [#allocation2], %s659_s17  ;;  %s1018_s23 = scalar_lea.hbm %s1068_s7, %s676_s18 }
  0x1a   : > { %v277_v4 = vpack.c.bf16 %v275_v3, %v275_v3  ;;  %706 = vmatprep.subr.bf16.mxu1 %v853_v1  ;;  %s596_s20 = sshll.u32 %s269_s19, 4  ;;  %s855_s28 = smov [#allocation2]   ;;  %s1020_s20 = int_to_ptr.vmem [resolvable:$true] %s596_s20 }
  0x1b   : > { %s789_s8 = scalar_lea.vmem %s1020_s20, 128  ;;  %s793_s9 = sshll.u32 %s855_s28, 4  ;;  %s794_s9 = int_to_ptr.vmem [resolvable:$false] %s793_s9 }
  0x1c   : > { %697 = vmatmul.mubr.msk.bf16.vlgmr.msra.gmra.mrb[0].mxu0 %vm298_vm1, %v277_v4  ;;  %v473_v4 = vrot.slane %v376_v47, %v358_v28  ;;  %p790_p11 = scmp.ne.s32.totalorder %s1020_s20, %s789_s8  ;;  %s795_s13 = scalar_lea.vmem %s794_s9, 256 }
  0x1d   : > { %720 = vmatprep.mubr.msk.bf16.mxu0 %vm854_vm0, %v853_v1  ;;  %707 = vmatpush3.bf16.msra.mxu1 %v770_v24  ;;  %p796_p0 = scmp.lt.s32.totalorder %s1020_s20, %s794_s9  ;;  %p797_p1 = scmp.lt.s32.totalorder %s795_s13, %s789_s8 }
  0x1e   : > { %713 = vmatpush3.bf16.msra.mxu0 %v771_v60  ;;  %p791_p12 = pnand %p790_p11, %p934_p5 }
  0x1f   : > { %714 = vmatprep.subr.bf16.mxu0 %v853_v1  ;;  %p798_p2 = por %p797_p1, %p796_p0 }
  0x20   : > { %p792_p13 = pneg %p791_p12 }
  0x22   : > { %715 = vmatpush3.bf16.msra.mxu0 %v772_v61  ;;  %p799_p3 = pnand %p798_p2, %p792_p13 }
  0x23   : > { %716 = vmatprep.subr.bf16.mxu0 %v853_v1 }
  0x26   : > { %717 = vmatpush3.bf16.msra.mxu0 %v773_v62 }
  0x27   : > { %718 = vmatprep.subr.bf16.mxu0 %v853_v1 }
  0x2a   : > { %719 = vmatpush3.bf16.msra.mxu0 %v774_v63 }
  0xef   : > { %v336_v10 = vpop.f32.mrb[0].mxu0 }
  0xf0   : > { %v337_v11 = vadd.f32 %v336_v10, %v285_v9  ;;  %v698_v12 = vpop.f32.mrb[1].mxu0 }
  0xf1   : > { %v339_v13 = vpop.f32.mrb[2].mxu0 }
  0xf2   : > { %v699_v14 = vpop.f32.mrb[3].mxu0  ;;  %v343_v15 = vsel %vm342_vm2, %v337_v11, 0.0 }
  0xf3   : > { %344 = vadd.xlane.f32.xlu0 %v343_v15 }
 0x180   : > { %v345_v16 = vpop.xlane.xlu0 %344 }
 0x181   : > { %v346_v17 = vmul.f32 0.015625, %v345_v16 }
 0x183   : > { %v347_v18 = vsub.f32 %v337_v11, %v346_v17 }
 0x185   : > { %v348_v19 = vmul.f32 %v347_v18, %v347_v18 }
 0x187   : > { %v349_v20 = vsel %vm342_vm2, %v348_v19, 0.0 }
 0x188   : > { %350 = vadd.xlane.f32.xlu0 %v349_v20  ;;  %v669_v20 = vld [vmem:[%s1067_s6] ss:$0 sm:$0xff] }
 0x215   : > { %v351_v25 = vpop.xlane.xlu0 %350 }
 0x216   : > { %v352_v26 = vmul.f32 0.015625, %v351_v25 }
 0x218   : > { %v353_v27 = vadd.f32 1e-05, %v352_v26 }
 0x21a   : > { %775 = vrsqrt.f32 %v353_v27 }
 0x224   : > { %v776_v31 = vpop.eup %775 }
 0x225   : > { %v355_v33 = vmul.f32 %v776_v31, %v347_v18 }
 0x227   : > { %v360_v34 = vmul.f32 %v359_v30, %v355_v33 }
 0x229   : > { %v365_v35 = vadd.f32 %v364_v32, %v360_v34 }
 0x22b   : > { %v366_v36 = vmin.f32 %v365_v35, 20.0  ;;  %v370_v42 = vmul.f32 2.0, %v365_v35 }
 0x22d   : > { %v367_v37 = vmul.f32 1.442695, %v366_v36 }
 0x22f   : > { %777 = vpow2.f32 %v367_v37 }
 0x239   : > { %v778_v38 = vpop.eup %777 }
 0x23a   : > { %v369_v39 = vadd.f32 1.0, %v778_v38 }
 0x23c   : > { %v371_v40 = vmul.f32 %v369_v39, %v369_v39 }
 0x23e   : > { %v372_v41 = vadd.f32 1.0, %v371_v40 }
 0x240   : > { %779 = vrcp.f32 %v372_v41 }
 0x24a   : > { %v780_v43 = vpop.eup %779 }
 0x24b   : > { %v374_v44 = vmul.f32 %v780_v43, %v370_v42 }
 0x24d   : > { %v375_v45 = vsub.f32 %v365_v35, %v374_v44 }
 0x24f   : > { %v377_v46 = vpack.c.bf16 %v375_v45, %v375_v45 }
 0x251   : > { %709 = vmatmul.mubr.msk.bf16.vlgmr.msra.gmra.mrb[0].mxu1 %vm342_vm2, %v377_v46 }
 0x324   : > { %v451_v49 = vpop.f32.mrb[0].mxu1 }
 0x325   : > { %v452_v50 = vadd.f32 %v451_v49, %v389_v48  ;;  %v710_v51 = vpop.f32.mrb[1].mxu1 }
 0x326   : > { %v454_v52 = vpop.f32.mrb[2].mxu1 }
 0x327   : > { %v711_v53 = vpop.f32.mrb[3].mxu1  ;;  %v457_v54 = vsel %vm342_vm2, %v452_v50, 0.0 }
 0x328   : > { %458 = vadd.xlane.f32.xlu1 %v457_v54 }
 0x3b5   : > { %v459_v55 = vpop.xlane.xlu1 %458 }
 0x3b6   : > { %v460_v56 = vmul.f32 0.015625, %v459_v55 }
 0x3b8   : > { %v461_v57 = vsub.f32 %v452_v50, %v460_v56 }
 0x3ba   : > { %v462_v58 = vmul.f32 %v461_v57, %v461_v57 }
 0x3bc   : > { %v463_v59 = vsel %vm342_vm2, %v462_v58, 0.0 }
 0x3bd   : > { %464 = vadd.xlane.f32.xlu1 %v463_v59 }
 0x44a   : > { %v465_v0 = vpop.xlane.xlu1 %464 }
 0x44b   : > { %v466_v2 = vmul.f32 0.015625, %v465_v0 }
 0x44d   : > { %v467_v3 = vadd.f32 1e-05, %v466_v2 }
 0x44f   : > { %781 = vrsqrt.f32 %v467_v3 }
 0x459   : > { %v782_v5 = vpop.eup %781 }
 0x45a   : > { %v469_v7 = vmul.f32 %v782_v5, %v461_v57 }
 0x45c   : > { %v474_v8 = vmul.f32 %v473_v4, %v469_v7 }
 0x45e   : > { %v479_v9 = vadd.f32 %v478_v6, %v474_v8 }
 0x460   : > { %v480_v10 = vmin.f32 %v479_v9, 20.0  ;;  %v484_v1 = vmul.f32 2.0, %v479_v9 }
 0x462   : > { %v481_v11 = vmul.f32 1.442695, %v480_v10 }
 0x464   : > { %783 = vpow2.f32 %v481_v11 }
 0x46e   : > { %v784_v12 = vpop.eup %783 }
 0x46f   : > { %v483_v13 = vadd.f32 1.0, %v784_v12 }
 0x471   : > { %v485_v14 = vmul.f32 %v483_v13, %v483_v13 }
 0x473   : > { %v486_v15 = vadd.f32 1.0, %v485_v14 }
 0x475   : > { %785 = vrcp.f32 %v486_v15 }
 0x47f   : > { %v786_v16 = vpop.eup %785 }
 0x480   : > { %v488_v17 = vmul.f32 %v786_v16, %v484_v1 }
 0x482   : > { %v489_v18 = vsub.f32 %v479_v9, %v488_v17 }
 0x484   : > { %v490_v19 = vpack.c.bf16 %v489_v18, %v489_v18 }
 0x486   : > { %721 = vmatmul.mubr.msk.bf16.vlgmr.msra.gmra.mrb[4].mxu0 %vm342_vm2, %v490_v19 }
 0x559   : > { %v567_v21 = vpop.f32.mrb[4].mxu0 }
 0x55a   : > { %v568_v22 = vadd.f32 %v669_v20, %v567_v21  ;;  %v722_v23 = vpop.f32.mrb[5].mxu0 }
 0x55b   : > { %v570_v24 = vpop.f32.mrb[6].mxu0 }
 0x55c   : > { %v723_v25 = vpop.f32.mrb[7].mxu0  ;;  %v573_v26 = vmul.f32 %v568_v22, %v568_v22 }
 0x55e   : > { %v575_v27 = vsel %vm574_vm3, %v573_v26, 0.0 }
 0x55f   : > { %576 = vadd.xlane.f32.xlu0 %v575_v27 }
 0x5ec   : > { %v577_v28 = vpop.xlane.xlu0 %576 }
 0x5ed   : > { %v578_v29 = vmax.f32 %v577_v28, 1e-24 }
 0x5ef   : > { %787 = vrsqrt.f32 %v578_v29 }
 0x5f9   : > { %v788_v30 = vpop.eup %787 }
 0x5fa   : > { %v580_v31 = vmul.f32 %v788_v30, %v568_v22 }
 0x5fc   : > { %581 = vst.msk [vmem:[%s269_s19] sm:$0xff] %vm574_vm3, %v580_v31 }
 0x5fd   : > { %802 = shalt.err (!%p799_p3)
}
 0x5fe   : > { %s803_s14 = scalar_lea.hbm %s1018_s23, 128  ;;  %s807_s17 = scalar_lea.hbm %s1068_s7, 256 }
 0x5ff   : > { %p804_p4 = scmp.ne.s32.totalorder %s1018_s23, %s803_s14  ;;  %p808_p9 = scmp.lt.u32.totalorder %s1018_s23, %s1068_s7 }
 0x600   : > { %p809_p10 = scmp.lt.u32.totalorder %s807_s17, %s803_s14  ;;  %p811_p12 = scmp.lt.u32.totalorder %s803_s14, %s1018_s23 }
 0x601   : > { %p805_p7 = pnand %p804_p4, %p934_p5 }
 0x602   : > { %p810_p11 = por %p809_p10, %p808_p9 }
 0x603   : > { %p806_p8 = pneg %p805_p7 }
 0x604   : > { %p812_p13 = por %p811_p12, %p810_p11 }
 0x606   : > { %p813_p0 = pnand %p812_p13, %p806_p8 }
 0x608   : > { %816 = shalt.err (!%p813_p0)
}
 0x609   : > { %724 = dma.vmem_to_hbm [thread:$0]  (%p934_p5), %s1020_s20, 128, %s1018_s23, %s583_s29  }
 0x60a PF: > { %p730_p1 = scmp.ge.s32.totalorder %s851_s27, 2  ;;  %s608_s21 = sand.u32 1, %s839_s24  }
 0x60b   : > { %s609_s22 = scalar_lea.sflag [#allocation3], %s608_s21 }
 0x60c   : > { %p727_p2 = pnand %p730_p1, %p938_p6 }
 0x60e   : > { %834 = dma.done.wait (!%p727_p2), %s609_s22, 128  }
 0x60f   : > { %836 = vsyncadd (!%p727_p2), %s609_s22, 4294967168  ;;  %p17_p3 = scmp.ge.s32.totalorder %s921_s30, 4   ;;  %s1071_s24 = smov %s843_s25 }
 0x610   : > { %s1072_s25 = smov %s847_s26  ;;  %s1073_s26 = smov %s932_s10 }
 0x611   : > { %s1074_s27 = smov %s921_s30  ;;  %19 = sbr.rel (!%p17_p3) target bundleno = 3 (0x3), region = 83 }
 0x618   :  { %614 = vsyncpa [#allocation3], 1 }
 0x619   :  { %616 = vsyncpa [#allocation3 + $0x1], 1 }

</bundles_post_ra>
